<compile_context>
chip_gen: v7x
topology: tpu7x:2x2x1
jax: 0.10.0
libtpu: 0.0.40
codegen_flags: <defaults>
</compile_context>

<pallas_src>
import functools

import jax
import jax.numpy as jnp
from jax.experimental import pallas as pl
from jax.experimental.pallas import tpu as pltpu


def _round_up(x, m):
    return ((x + m - 1) // m) * m


def linear_module_kernel(x_ref, v_ref, w_ref, b_ref, o_ref):
    # x: [tm, D] f32 (pipelined); v: [1, D], w: [OUT, D], b: [1, OUT] (resident).
    offsets = x_ref[...] - v_ref[...]                          # f32 VPU, D=32
    y = jax.lax.dot_general(
        offsets, w_ref[...],
        dimension_numbers=(((1,), (1,)), ((), ())),            # offsets @ w.T
        preferred_element_type=jnp.float32,
        precision=jax.lax.Precision.HIGHEST,
    )
    o_ref[...] = jnp.maximum(y + b_ref[...], 0.0)


@functools.partial(jax.jit, static_argnames=("block_rows",))
def linear_module_forward(semantic_vec, vertice, weight, bias, *, block_rows=4096):
    """relu((semantic_vec - vertice) @ weight.T + bias), all in f32.

    semantic_vec: [B, D] f32, vertice: [D] f32, weight: [OUT, D] f32, bias: [OUT] f32.
    Returns: [B, OUT] f32.
    """
    B, D = semantic_vec.shape
    OUT = weight.shape[0]

    v2 = vertice.reshape(1, D)        # 2-D for VMEM residency / broadcasting
    b2 = bias.reshape(1, OUT)

    # Row tile: big tiles amortize per-step overhead; >= 2 grid steps when
    # B >= 16 so v7x's two TensorCores both get work. For tiny B the block
    # equals the full batch dim (exempt from the sublane-multiple-of-8 rule).
    if B < 16:
        tm = B
    else:
        tm = min(_round_up(block_rows, 8), _round_up(pl.cdiv(B, 2), 8))
    grid = (pl.cdiv(B, tm),)          # ragged tail handled by Pallas masking

    return pl.pallas_call(
        linear_module_kernel,
        out_shape=jax.ShapeDtypeStruct((B, OUT), jnp.float32),
        grid=grid,
        in_specs=[
            pl.BlockSpec((tm, D), lambda i: (i, 0)),           # x tile (pipelined)
            pl.BlockSpec((1, D), lambda i: (0, 0)),            # vertice (resident)
            pl.BlockSpec((OUT, D), lambda i: (0, 0)),          # weight  (resident)
            pl.BlockSpec((1, OUT), lambda i: (0, 0)),          # bias    (resident)
        ],
        out_specs=pl.BlockSpec((tm, OUT), lambda i: (i, 0)),   # unpadded OUT lanes
        compiler_params=pltpu.CompilerParams(
            dimension_semantics=("parallel",),
            vmem_limit_bytes=16 << 20,
        ),
    )(semantic_vec, v2, weight, b2)


if __name__ == "__main__":
    # Small, deterministic shapes consistent with the module:
    # vertice.numel() = D = 32 input features, out_dim = 16, batch = 8.
    B, D, OUT = 8, 32, 16

    key = jax.random.PRNGKey(0)
    k_vert, k_x, k_w, k_b, k_eps = jax.random.split(key, 5)

    vertice = jax.random.normal(k_vert, (D,), dtype=jnp.float32)
    semantic_vec = jax.random.normal(k_x, (B, D), dtype=jnp.float32)

    # nn.Linear(D, OUT) init: U(-1/sqrt(D), 1/sqrt(D)) for weight and bias.
    bound = 1.0 / (D ** 0.5)
    weight = jax.random.uniform(k_w, (OUT, D), minval=-bound, maxval=bound,
                                dtype=jnp.float32)
    bias = jax.random.uniform(k_b, (OUT,), minval=-bound, maxval=bound,
                              dtype=jnp.float32)

    out = linear_module_forward(semantic_vec, vertice, weight, bias)
    jax.block_until_ready(out)

    # Reference in plain JAX (same math as the PyTorch forward, f32).
    ref = jnp.maximum((semantic_vec - vertice) @ weight.T + bias, 0.0)
    assert out.shape == (B, OUT)
    assert jnp.allclose(out, ref, atol=1e-5, rtol=1e-5), \
        f"max abs err {jnp.max(jnp.abs(out - ref))}"

    # Worst case for cancellation: semantic_vec barely off the vertice.
    x_tiny = vertice[None, :] + 1e-3 * jax.random.normal(k_eps, (B, D),
                                                         dtype=jnp.float32)
    out_tiny = linear_module_forward(x_tiny, vertice, weight, bias)
    jax.block_until_ready(out_tiny)
    ref_tiny = jnp.maximum((x_tiny - vertice) @ weight.T + bias, 0.0)
    assert jnp.allclose(out_tiny, ref_tiny, atol=1e-5, rtol=1e-4), \
        f"max abs err (tiny offsets) {jnp.max(jnp.abs(out_tiny - ref_tiny))}"

    print("KERNEL_OK")
</pallas_src>

<mosaic_0001>
module attributes {stable_mosaic.version = 11 : i64} {
  func.func @linear_module_kernel(%arg0: i32, %arg1: memref<8x32xf32, #tpu.memory_space<vmem>>, %arg2: memref<1x32xf32, #tpu.memory_space<vmem>>, %arg3: memref<16x32xf32, #tpu.memory_space<vmem>>, %arg4: memref<1x16xf32, #tpu.memory_space<vmem>>, %arg5: memref<8x16xf32, #tpu.memory_space<vmem>>) attributes {dimension_semantics = [#tpu.dimension_semantics<parallel>], iteration_bounds = array<i64: 1>, scalar_prefetch = 0 : i64, scratch_operands = 0 : i64, tpu.core_type = #tpu.core_type<tc>, window_params = [{transform_indices = @transform_0, window_bounds = array<i64: 8, 32>}, {pipeline_mode = #tpu.pipeline_mode<synchronous>, transform_indices = @transform_1, window_bounds = array<i64: 1, 32>}, {pipeline_mode = #tpu.pipeline_mode<synchronous>, transform_indices = @transform_2, window_bounds = array<i64: 16, 32>}, {pipeline_mode = #tpu.pipeline_mode<synchronous>, transform_indices = @transform_3, window_bounds = array<i64: 1, 16>}, {transform_indices = @transform_4, window_bounds = array<i64: 8, 16>}]} {
    %c0 = arith.constant 0 : index
    %c0_0 = arith.constant 0 : index
    %0 = vector.load %arg1[%c0, %c0_0] : memref<8x32xf32, #tpu.memory_space<vmem>>, vector<8x32xf32>
    %c0_1 = arith.constant 0 : index
    %c0_2 = arith.constant 0 : index
    %1 = vector.load %arg2[%c0_1, %c0_2] : memref<1x32xf32, #tpu.memory_space<vmem>>, vector<1x32xf32>
    %2 = vector.broadcast %1 : vector<1x32xf32> to vector<8x32xf32>
    %3 = arith.subf %0, %2 : vector<8x32xf32>
    %c0_3 = arith.constant 0 : index
    %c0_4 = arith.constant 0 : index
    %4 = vector.load %arg3[%c0_3, %c0_4] : memref<16x32xf32, #tpu.memory_space<vmem>>, vector<16x32xf32>
    %cst = arith.constant dense<0.000000e+00> : vector<8x16xf32>
    %5 = tpu.matmul %3, %4, %cst {dimension_numbers = #tpu.dot_dimension_numbers<[1], [1], [0], [0], [0, 0, 1, 0], [], []>, precision = #tpu.contract_precision<fp32>} : vector<8x32xf32>, vector<16x32xf32>, vector<8x16xf32> -> vector<8x16xf32>
    %c0_5 = arith.constant 0 : index
    %c0_6 = arith.constant 0 : index
    %6 = vector.load %arg4[%c0_5, %c0_6] : memref<1x16xf32, #tpu.memory_space<vmem>>, vector<1x16xf32>
    %7 = vector.broadcast %6 : vector<1x16xf32> to vector<8x16xf32>
    %8 = arith.addf %5, %7 : vector<8x16xf32>
    %cst_7 = arith.constant 0.000000e+00 : f32
    %9 = vector.broadcast %cst_7 : f32 to vector<8x16xf32>
    %10 = arith.maximumf %8, %9 : vector<8x16xf32>
    %c0_8 = arith.constant 0 : index
    %c0_9 = arith.constant 0 : index
    %11 = vector.load %arg5[%c0_8, %c0_9] : memref<8x16xf32, #tpu.memory_space<vmem>>, vector<8x16xf32>
    tpu.vector_store %arg5[%c0_8, %c0_9], %10 {strides = array<i32>} : memref<8x16xf32, #tpu.memory_space<vmem>>, vector<8x16xf32>,
    return
  }
  func.func @transform_0(%arg0: i32) -> (i32, i32) {
    %c0_i32 = arith.constant 0 : i32
    %c0_i32_0 = arith.constant 0 : i32
    return %arg0, %c0_i32 : i32, i32
  }
  func.func @transform_1(%arg0: i32) -> (i32, i32) {
    %c0_i32 = arith.constant 0 : i32
    %c0_i32_0 = arith.constant 0 : i32
    %c0_i32_1 = arith.constant 0 : i32
    return %c0_i32, %c0_i32_0 : i32, i32
  }
  func.func @transform_2(%arg0: i32) -> (i32, i32) {
    %c0_i32 = arith.constant 0 : i32
    %c0_i32_0 = arith.constant 0 : i32
    %c0_i32_1 = arith.constant 0 : i32
    return %c0_i32, %c0_i32_0 : i32, i32
  }
  func.func @transform_3(%arg0: i32) -> (i32, i32) {
    %c0_i32 = arith.constant 0 : i32
    %c0_i32_0 = arith.constant 0 : i32
    %c0_i32_1 = arith.constant 0 : i32
    return %c0_i32, %c0_i32_0 : i32, i32
  }
  func.func @transform_4(%arg0: i32) -> (i32, i32) {
    %c0_i32 = arith.constant 0 : i32
    %c0_i32_0 = arith.constant 0 : i32
    return %arg0, %c0_i32 : i32, i32
  }
}

</mosaic_0001>

<bundles_post_ra>
// kernel: linear_module_forward.1
= control target key start
LH: loop header
LB: loop body
LE: loop exit
PB: predicated region body
PF: predicated region fallthrough
CT: control target
= control target key end

     0   :  { %9 = vsyncpa [#allocation3], 0  ;;  %s808_s0 = inlined_call_operand.hbm [shape: f32[8,32], index: 0, kind: input, shape index: {}]   ;;  %s809_s1 = inlined_call_operand.vmem [shape: f32[1,32], index: 1, kind: input, shape index: {}]   ;;  %s810_s2 = inlined_call_operand.hbm [shape: f32[16,32], index: 2, kind: input, shape index: {}]   ;;  %s811_s3 = inlined_call_operand.vmem [shape: f32[1,16], index: 3, kind: input, shape index: {}]   ;;  %s812_s4 = inlined_call_operand.hbm [shape: f32[8,16], index: 4, kind: output, shape index: {}]  }
   0x1   :  { %10 = vsyncpa [#allocation6], 0 }
   0x2   :  { %11 = vsyncpa [#allocation4], 0  ;;  %s720_s15 = smov [#allocation2]   ;;  %s721_s17 = smov [#allocation5]  }
   0x3   :  { %s18_s16 = sshll.u32 %s720_s15, 4  ;;  %s29_s18 = sshll.u32 %s721_s17, 4  ;;  %s19_s16 = int_to_ptr.vmem [resolvable:$true] %s18_s16  ;;  %s753_s18 = int_to_ptr.vmem [resolvable:$true] %s29_s18 }
   0x4   :  { %s648_s21 = scalar_lea.hbm %s808_s0, 128 }
   0x5   :  { %p649_p0 = scmp.ne.s32.totalorder %s808_s0, %s648_s21  ;;  %p652_p1 = scmp.lt.u32.totalorder %s648_s21, %s808_s0 }
   0x7   :  { %p654_p2 = pnand %p652_p1, %p649_p0 }
   0x9   :  { %657 = shalt.err (!%p654_p2)
}
   0xa   :  { %s658_s26 = scalar_lea.vmem %s19_s16, 128  ;;  %p663_p4 = scmp.lt.s32.totalorder %s19_s16, %s19_s16 }
   0xb   :  { %p659_p3 = scmp.ne.s32.totalorder %s19_s16, %s658_s26  ;;  %p664_p5 = scmp.lt.s32.totalorder %s658_s26, %s658_s26 }
   0xd   :  { %p665_p6 = por %p664_p5, %p663_p4 }
   0xf   :  { %p666_p7 = pnand %p665_p6, %p659_p3 }
  0x11   :  { %669 = shalt.err (!%p666_p7)
}
  0x12   :  { %21 = dma.hbm_to_vmem [thread:$0]  %s808_s0, 128, %s19_s16, [#allocation3]  }
  0x13   :  { %s670_s5 = scalar_lea.hbm %s810_s2, 256 }
  0x14   :  { %p671_p8 = scmp.ne.s32.totalorder %s810_s2, %s670_s5  ;;  %p674_p9 = scmp.lt.u32.totalorder %s670_s5, %s810_s2 }
  0x16   :  { %p676_p10 = pnand %p674_p9, %p671_p8 }
  0x18   :  { %679 = shalt.err (!%p676_p10)
}
  0x19   :  { %s680_s10 = scalar_lea.vmem %s753_s18, 256  ;;  %p685_p12 = scmp.lt.s32.totalorder %s753_s18, %s753_s18 }
  0x1a   :  { %p681_p11 = scmp.ne.s32.totalorder %s753_s18, %s680_s10  ;;  %p686_p13 = scmp.lt.s32.totalorder %s680_s10, %s680_s10 }
  0x1c   :  { %p687_p0 = por %p686_p13, %p685_p12 }
  0x1e   :  { %p688_p1 = pnand %p687_p0, %p681_p11 }
  0x20   :  { %691 = shalt.err (!%p688_p1)
}
  0x21   :  { %s722_s0 = smov 128   ;;  %s723_s11 = smov 8  }
  0x22   :  { %35 = dma.hbm_to_vmem [thread:$0]  %s810_s2, 256, %s753_s18, [#allocation6], %s722_s0, %s722_s0, %s723_s11  }
  0x23   :  { %714 = dma.done.wait [#allocation3], 128  }
  0x24   :  { %715 = vsyncadd [#allocation3], 4294967168 }
  0x25   :  { %716 = dma.done.wait [#allocation6], 256  }
  0x26   :  { %717 = vsyncadd [#allocation6], 4294967040  ;;  %v724_v0 = vmov 0.0|0.0   ;;  %vm725_vm0 = vmmov 0   ;;  %v726_v1 = vmov 0.0   ;;  %vm62_vm1 = vcmask 261120  }
  0x27   :  { %612 = vmatprep.subr.bf16.mxu1 %v724_v0  ;;  %621 = vmatprep.subr.bf16.mxu0 %v724_v0  ;;  %v53_v2 = vld [vmem:[#allocation5] sm:$0xff]  ;;  %v54_v3 = vld [vmem:[#allocation5 + $0x8] sm:$0xff]  ;;  %v44_v4 = vld [vmem:[#allocation2] sm:$0xff]  ;;  %s727_s16 = smov [#allocation7]   ;;  %vm532_vm2 = vcmask 130048  }
  0x28   :  { %595 = vmatprep.mubr.msk.f32.mxu0 %vm725_vm0, %v726_v1  ;;  %574 = vmatprep.mubr.msk.f32.mxu1 %vm725_vm0, %v726_v1  ;;  %v67_v5 = vsel %vm62_vm1, %v53_v2, 0  ;;  %v70_v6 = vsel %vm62_vm1, %v54_v3, 0  ;;  %v550_v7 = vld [vmem:[%s809_s1] ss:$0 sm:$0xff]  ;;  %s540_s17 = sshll.u32 %s727_s16, 4  ;;  %s541_s17 = int_to_ptr.vmem [resolvable:$true] %s540_s17 }
  0x29   :  { %v73_v8 = vand.u32 4294901760, %v67_v5  ;;  %v76_v9 = vand.u32 4294901760, %v70_v6  ;;  %v52_v10 = vsub.f32 %v44_v4, %v550_v7  ;;  %v551_v30 = vld [vmem:[%s811_s3] ss:$0 sm:$0xff]  ;;  %s692_s18 = scalar_lea.vmem %s541_s17, 128  ;;  %p697_p3 = scmp.lt.s32.totalorder %s541_s17, %s541_s17 }
  0x2a   :  { %p693_p2 = scmp.ne.s32.totalorder %s541_s17, %s692_s18  ;;  %p698_p4 = scmp.lt.s32.totalorder %s692_s18, %s692_s18 }
  0x2b   :  { %v613_v11 = vpack.c.bf16 %v76_v9, %v73_v8  ;;  %v151_v12 = vsub.f32 %v67_v5, %v73_v8  ;;  %v158_v13 = vsub.f32 %v70_v6, %v76_v9  ;;  %v64_v14 = vsel %vm62_vm1, %v52_v10, 0 }
  0x2c   :  { %v139_v15 = vand.u32 4294901760, %v64_v14  ;;  %p699_p5 = por %p698_p4, %p697_p3 }
  0x2d   :  { %614 = vmatpush3.bf16.xpose.msra.mxu1 %v613_v11  ;;  %623 = vmatpush3.bf16.xpose.msra.mxu0 %v613_v11  ;;  %v152_v16 = vand.u32 4294901760, %v151_v12  ;;  %v159_v17 = vand.u32 4294901760, %v158_v13  ;;  %v619_v28 = vpack.c.bf16 %v158_v13, %v151_v12 }
  0x2e   :  { %615 = vmatprep.subr.bf16.mxu1 %v724_v0  ;;  %v140_v18 = vsub.f32 %v64_v14, %v139_v15  ;;  %624 = vmatprep.subr.bf16.mxu0 %v724_v0  ;;  %p700_p6 = pnand %p699_p5, %p693_p2 }
  0x2f   :  { %v153_v19 = vsub.f32 %v151_v12, %v152_v16  ;;  %v160_v20 = vsub.f32 %v158_v13, %v159_v17  ;;  %v625_v24 = vpack.c.bf16 %v159_v17, %v152_v16 }
  0x30   :  { %v141_v21 = vand.u32 4294901760, %v140_v18 }
  0x31   :  { %v154_v22 = vand.u32 4294901760, %v153_v19  ;;  %v161_v23 = vand.u32 4294901760, %v160_v20 }
  0x32   :  { %v142_v25 = vsub.f32 %v140_v18, %v141_v21 }
  0x33   :  { %v616_v26 = vpack.c.bf16 %v161_v23, %v154_v22 }
  0x34   :  { %596 = vmatmul.mubr.f32.vlgmr.msra.gmra.mrb[0].mxu0 %v141_v21  ;;  %v143_v27 = vand.u32 4294901760, %v142_v25 }
  0x35   :  { %626 = vmatpush3.bf16.xpose.msra.mxu0 %v625_v24  ;;  %602 = vmatprep.mubr.msk.f32.mxu0 %vm725_vm0, %v726_v1 }
  0x36   :  { %575 = vmatmul.mubr.f32.vlgmr.msra.gmra.mrb[0].mxu1 %v143_v27  ;;  %627 = vmatprep.subr.bf16.mxu0 %v724_v0 }
  0x37   :  { %617 = vmatpush3.bf16.xpose.msra.mxu1 %v616_v26  ;;  %581 = vmatprep.mubr.msk.f32.mxu1 %vm725_vm0, %v726_v1 }
  0x38   :  { %618 = vmatprep.subr.bf16.mxu1 %v724_v0 }
  0x3c   :  { %603 = vmatmul.mubr.f32.vlgmr.msra.gmra.mrb[0].mxu0 %v139_v15 }
  0x3d   :  { %629 = vmatpush3.bf16.xpose.msra.mxu0 %v613_v11  ;;  %609 = vmatprep.mubr.msk.f32.mxu0 %vm725_vm0, %v726_v1 }
  0x3e   :  { %582 = vmatmul.mubr.f32.vlgmr.msra.gmra.mrb[0].mxu1 %v139_v15 }
  0x3f   :  { %620 = vmatpush3.bf16.xpose.msra.mxu1 %v619_v28  ;;  %588 = vmatprep.mubr.msk.f32.mxu1 %vm725_vm0, %v726_v1 }
  0x44   :  { %610 = vmatmul.mubr.f32.vlgmr.msra.gmra.mrb[0].mxu0 %v139_v15 }
  0x46   :  { %589 = vmatmul.mubr.f32.vlgmr.msra.gmra.mrb[0].mxu1 %v140_v18 }
 0x117   :  { %v527_v29 = vpop.f32.mrb[0].mxu0 }
 0x118   :  { %v611_v31 = vpop.f32.mrb[1].mxu0 }
 0x119   :  { %v302_v32 = vpop.f32.mrb[0].mxu1 }
 0x11a   :  { %v630_v33 = vadd.f32 %v551_v30, %v302_v32  ;;  %v590_v34 = vpop.f32.mrb[1].mxu1 }
 0x11c   :  { %v631_v35 = vadd.f32 %v630_v33, %v527_v29 }
 0x11e   :  { %v531_v36 = vmax.f32 %v631_v35, 0.0 }
 0x120   :  { %533 = vst.msk [vmem:[#allocation7] sm:$0xff] %vm532_vm2, %v531_v36 }
 0x121   :  { %703 = shalt.err (!%p700_p6)
}
 0x122   :  { %s704_s20 = scalar_lea.hbm %s812_s4, 128 }
 0x123   :  { %p705_p7 = scmp.ne.s32.totalorder %s812_s4, %s704_s20  ;;  %p708_p8 = scmp.lt.u32.totalorder %s704_s20, %s812_s4 }
 0x125   :  { %p710_p9 = pnand %p708_p8, %p705_p7 }
 0x127   :  { %713 = shalt.err (!%p710_p9)
}
 0x128   :  { %543 = dma.vmem_to_hbm [thread:$0]  %s541_s17, 128, %s812_s4, [#allocation4]  }
 0x129   :  { %718 = dma.done.wait [#allocation4], 128  }
 0x12a   :  { %719 = vsyncadd [#allocation4], 4294967168 }
 0x12b   :  { %547 = vsyncpa [#allocation3], 1 }
 0x12c   :  { %548 = vsyncpa [#allocation6], 1 }
 0x12d   :  { %549 = vsyncpa [#allocation4], 1 }

</bundles_post_ra>
